<compile_context>
chip_gen: v7x
topology: tpu7x:2x2x1
jax: 0.10.0
libtpu: 0.0.40
codegen_flags: <defaults>
</compile_context>

<pallas_src>
import functools
from collections import namedtuple

import jax
import jax.numpy as jnp
from jax import lax
from jax.experimental import pallas as pl
from jax.experimental.pallas import tpu as pltpu

InceptionOutputs = namedtuple("InceptionOutputs", ["logits", "aux_logits"])

MARGIN = 1.0


def _make_kernel(n_pairs: int, total_b: int, margin: float):
    """Kernel processing `n_pairs` (x0, x1, y) pairs per batch tile.

    Ref order: [x0_0, x1_0, y_0, ..., x0_{P-1}, x1_{P-1}, y_{P-1},
                out_0, ..., out_{P-1}, acc_0, ..., acc_{P-1}]
    """

    def kernel(*refs):
        in_refs = refs[: 3 * n_pairs]
        out_refs = refs[3 * n_pairs: 4 * n_pairs]
        acc_refs = refs[4 * n_pairs:]

        i = pl.program_id(0)

        @pl.when(i == 0)
        def _init():
            for acc in acc_refs:
                acc[...] = jnp.zeros_like(acc)

        for j in range(n_pairs):
            x0_ref, x1_ref, y_ref = in_refs[3 * j: 3 * j + 3]
            x0 = x0_ref[...].astype(jnp.float32)          # (TB, C)
            x1 = x1_ref[...].astype(jnp.float32)          # (TB, C)
            y = y_ref[...].astype(jnp.float32)            # (TB, 1)

            # Per-sample L1 distance over the class dimension (lane reduce).
            d = jnp.sum(jnp.abs(x0 - x1), axis=1, keepdims=True)      # (TB, 1)

            # Contrastive (Hadsell-style) loss terms.
            pos = y * d * d
            neg = (1.0 - y) * jnp.square(jnp.maximum(margin - d, 0.0))

            # Mask rows that fall past the real batch (ragged final tile /
            # block padding garbage is discarded by the select).
            tb = d.shape[0]
            row = i * tb + lax.broadcasted_iota(jnp.int32, (tb, 1), 0)
            contrib = jnp.where(row < total_b, pos + neg, 0.0)        # (TB, 1)

            acc_refs[j][...] += jnp.sum(contrib, axis=0, keepdims=True)  # (1, 1)

        @pl.when(i == pl.num_programs(0) - 1)
        def _finalize():
            inv = 1.0 / (2.0 * float(total_b))   # mean over GLOBAL batch, /2
            for j in range(n_pairs):
                out_refs[j][...] = acc_refs[j][...] * inv

    return kernel


def _choose_tb(b: int, c: int, n_pairs: int, itemsize: int) -> int:
    """Batch-tile rows so double-buffered input tiles stay ~<=12 MiB (fits the
    scoped-VMEM defaults on v5e/v6e and v7x's smaller 64 MiB VMEM)."""
    budget = 12 * 1024 * 1024
    per_row = 2 * 2 * n_pairs * max(c, 128) * itemsize   # 2 inputs x 2 buffers per pair
    cap = max(8, min(1024, budget // per_row))
    cap = max(8, (cap // 8) * 8)                          # sublane multiple
    if b <= cap:
        return b                                          # full-dim block: always legal
    return cap


def _pallas_siamese_losses(pairs, margin: float = MARGIN, tb: int | None = None):
    """pairs: list of (x0, x1, y2d); x*: (B, C) any float dtype; y2d: (B, 1) f32.
    Returns a list of scalar losses, one per pair, from a single pallas_call."""
    n_pairs = len(pairs)
    b = pairs[0][0].shape[0]
    for (x0, x1, y2d) in pairs:
        assert x0.shape == x1.shape and x0.shape[0] == b and y2d.shape == (b, 1)

    max_c = max(p[0].shape[1] for p in pairs)
    itemsize = max(jnp.dtype(p[0].dtype).itemsize for p in pairs)
    if tb is None:
        tb = _choose_tb(b, max_c, n_pairs, itemsize)
    num_tiles = pl.cdiv(b, tb)

    in_specs = []
    operands = []
    for (x0, x1, y2d) in pairs:
        c = x0.shape[1]
        in_specs += [
            pl.BlockSpec((tb, c), lambda i: (i, 0)),
            pl.BlockSpec((tb, c), lambda i: (i, 0)),
            pl.BlockSpec((tb, 1), lambda i: (i, 0)),
        ]
        operands += [x0, x1, y2d]

    out_shape = tuple(jax.ShapeDtypeStruct((1, 1), jnp.float32) for _ in range(n_pairs))
    out_specs = [pl.BlockSpec((1, 1), lambda i: (0, 0)) for _ in range(n_pairs)]
    scratch_shapes = [pltpu.VMEM((1, 1), jnp.float32) for _ in range(n_pairs)]

    kernel = _make_kernel(n_pairs, b, margin)
    outs = pl.pallas_call(
        kernel,
        out_shape=out_shape,
        grid_spec=pltpu.PrefetchScalarGridSpec(
            num_scalar_prefetch=0,
            grid=(num_tiles,),
            in_specs=in_specs,
            out_specs=out_specs,
            scratch_shapes=scratch_shapes,
        ),
        compiler_params=pltpu.CompilerParams(
            dimension_semantics=("arbitrary",),     # accumulator axis
            vmem_limit_bytes=32 * 1024 * 1024,
        ),
    )(*operands)
    return [o[0, 0] for o in outs]


def _prep_y(y):
    return jnp.asarray(y).reshape(-1, 1).astype(jnp.float32)


class SiameseLossForInceptionV3:
    """JAX/Pallas port of the PyTorch module (no learnable parameters)."""

    def calc_distance(self, x0, x1):
        # Not on the hot path; plain JAX L1 distance.
        return jnp.sum(jnp.abs(x0.astype(jnp.float32) - x1.astype(jnp.float32)), axis=1)

    def calc_loss(self, x0, x1, y):
        return _pallas_siamese_losses([(x0, x1, _prep_y(y))])[0]

    def forward(self, params, y, is_eval: bool = False):
        x0 = params[0]
        x1 = params[1]
        if is_eval:
            return self.calc_loss(x0, x1, y)
        main_y = y[0]
        aux_y = y[1]
        # Single fused pallas_call covering both (main, aux) losses.
        losses = _pallas_siamese_losses([
            (x0.logits, x1.logits, _prep_y(main_y)),
            (x0.aux_logits, x1.aux_logits, _prep_y(aux_y)),
        ])
        return (losses[0], losses[1])

    __call__ = forward


if __name__ == "__main__":
    # ---------- small training/eval check (fused main+aux, f32 logits) ----------
    B, C = 8, 128

    key = jax.random.PRNGKey(0)
    k0, k1, k2, k3, ky0, ky1, k4, k5, ky2 = jax.random.split(key, 9)

    x0 = InceptionOutputs(
        logits=jax.random.normal(k0, (B, C), dtype=jnp.float32),
        aux_logits=jax.random.normal(k1, (B, C), dtype=jnp.float32),
    )
    x1 = InceptionOutputs(
        logits=jax.random.normal(k2, (B, C), dtype=jnp.float32),
        aux_logits=jax.random.normal(k3, (B, C), dtype=jnp.float32),
    )
    main_y = jax.random.bernoulli(ky0, 0.5, (B,)).astype(jnp.float32)
    aux_y = jax.random.bernoulli(ky1, 0.5, (B,)).astype(jnp.float32)

    loss_mod = SiameseLossForInceptionV3()

    main_loss, aux_loss = loss_mod((x0, x1), (main_y, aux_y), is_eval=False)
    eval_loss = loss_mod((x0.logits, x1.logits), main_y, is_eval=True)
    jax.block_until_ready((main_loss, aux_loss, eval_loss))

    def ref_loss(a, b, y):
        a = a.astype(jnp.float32)
        b = b.astype(jnp.float32)
        d = jnp.sum(jnp.abs(a - b), axis=1)
        return jnp.mean(y * d * d + (1.0 - y) * jnp.maximum(MARGIN - d, 0.0) ** 2) / 2.0

    assert jnp.allclose(main_loss, ref_loss(x0.logits, x1.logits, main_y), rtol=1e-5, atol=1e-5)
    assert jnp.allclose(aux_loss, ref_loss(x0.aux_logits, x1.aux_logits, aux_y), rtol=1e-5, atol=1e-5)
    assert jnp.allclose(eval_loss, main_loss, rtol=1e-5, atol=1e-5)

    # ---------- tiled + ragged-batch + bf16 path (forced small tile) ----------
    B2 = 20  # not a multiple of the forced tile -> exercises masking
    xa = jax.random.normal(k4, (B2, C), dtype=jnp.bfloat16)
    xb = jax.random.normal(k5, (B2, C), dtype=jnp.bfloat16)
    y2 = jax.random.bernoulli(ky2, 0.5, (B2,)).astype(jnp.float32)

    tiled_loss = _pallas_siamese_losses([(xa, xb, _prep_y(y2))], tb=8)[0]
    jax.block_until_ready(tiled_loss)
    assert jnp.allclose(tiled_loss, ref_loss(xa, xb, y2), rtol=1e-4, atol=1e-5)

    print("KERNEL_OK")
</pallas_src>

<mosaic_0001>
module attributes {stable_mosaic.version = 11 : i64} {
  func.func @kernel(%arg0: i32, %arg1: memref<8x128xf32, #tpu.memory_space<vmem>>, %arg2: memref<8x128xf32, #tpu.memory_space<vmem>>, %arg3: memref<8x1xf32, #tpu.memory_space<vmem>>, %arg4: memref<8x128xf32, #tpu.memory_space<vmem>>, %arg5: memref<8x128xf32, #tpu.memory_space<vmem>>, %arg6: memref<8x1xf32, #tpu.memory_space<vmem>>, %arg7: memref<1x1xf32, #tpu.memory_space<vmem>>, %arg8: memref<1x1xf32, #tpu.memory_space<vmem>>, %arg9: memref<1x1xf32, #tpu.memory_space<vmem>>, %arg10: memref<1x1xf32, #tpu.memory_space<vmem>>) attributes {dimension_semantics = [#tpu.dimension_semantics<arbitrary>], iteration_bounds = array<i64: 1>, scalar_prefetch = 0 : i64, scratch_operands = 2 : i64, tpu.core_type = #tpu.core_type<tc>, window_params = [{transform_indices = @transform_0, window_bounds = array<i64: 8, 128>}, {transform_indices = @transform_1, window_bounds = array<i64: 8, 128>}, {transform_indices = @transform_2, window_bounds = array<i64: 8, 1>}, {transform_indices = @transform_3, window_bounds = array<i64: 8, 128>}, {transform_indices = @transform_4, window_bounds = array<i64: 8, 128>}, {transform_indices = @transform_5, window_bounds = array<i64: 8, 1>}, {pipeline_mode = #tpu.pipeline_mode<synchronous>, transform_indices = @transform_6, window_bounds = array<i64: 1, 1>}, {pipeline_mode = #tpu.pipeline_mode<synchronous>, transform_indices = @transform_7, window_bounds = array<i64: 1, 1>}]} {
    %c0_i32 = arith.constant 0 : i32
    %0 = arith.cmpi eq, %arg0, %c0_i32 : i32
    %1 = arith.extui %0 : i1 to i32
    %c0_i32_0 = arith.constant 0 : i32
    %2 = arith.cmpi ne, %1, %c0_i32_0 : i32
    scf.if %2 {
      %cst_36 = arith.constant 0.000000e+00 : f32
      %68 = vector.broadcast %cst_36 : f32 to vector<1x1xf32>
      %c0_37 = arith.constant 0 : index
      %c0_38 = arith.constant 0 : index
      %69 = vector.load %arg9[%c0_37, %c0_38] : memref<1x1xf32, #tpu.memory_space<vmem>>, vector<1x1xf32>
      tpu.vector_store %arg9[%c0_37, %c0_38], %68 {strides = array<i32>} : memref<1x1xf32, #tpu.memory_space<vmem>>, vector<1x1xf32>,
      %cst_39 = arith.constant 0.000000e+00 : f32
      %70 = vector.broadcast %cst_39 : f32 to vector<1x1xf32>
      %c0_40 = arith.constant 0 : index
      %c0_41 = arith.constant 0 : index
      %71 = vector.load %arg10[%c0_40, %c0_41] : memref<1x1xf32, #tpu.memory_space<vmem>>, vector<1x1xf32>
      tpu.vector_store %arg10[%c0_40, %c0_41], %70 {strides = array<i32>} : memref<1x1xf32, #tpu.memory_space<vmem>>, vector<1x1xf32>,
    } else {
    }
    %c0 = arith.constant 0 : index
    %c0_1 = arith.constant 0 : index
    %3 = vector.load %arg1[%c0, %c0_1] : memref<8x128xf32, #tpu.memory_space<vmem>>, vector<8x128xf32>
    %c0_2 = arith.constant 0 : index
    %c0_3 = arith.constant 0 : index
    %4 = vector.load %arg2[%c0_2, %c0_3] : memref<8x128xf32, #tpu.memory_space<vmem>>, vector<8x128xf32>
    %c0_4 = arith.constant 0 : index
    %c0_5 = arith.constant 0 : index
    %5 = vector.load %arg3[%c0_4, %c0_5] : memref<8x1xf32, #tpu.memory_space<vmem>>, vector<8x1xf32>
    %6 = arith.subf %3, %4 : vector<8x128xf32>
    %7 = math.absf %6 : vector<8x128xf32>
    %cst = arith.constant dense<0.000000e+00> : vector<8xf32>
    %8 = vector.multi_reduction <add>, %7, %cst [1] : vector<8x128xf32> to vector<8xf32>
    %9 = vector.shape_cast %8 : vector<8xf32> to vector<8x1xf32>
    %10 = arith.mulf %5, %9 : vector<8x1xf32>
    %11 = arith.mulf %10, %9 : vector<8x1xf32>
    %cst_6 = arith.constant 1.000000e+00 : f32
    %12 = vector.broadcast %cst_6 : f32 to vector<8x1xf32>
    %13 = arith.subf %12, %5 : vector<8x1xf32>
    %cst_7 = arith.constant 1.000000e+00 : f32
    %14 = vector.broadcast %cst_7 : f32 to vector<8x1xf32>
    %15 = arith.subf %14, %9 : vector<8x1xf32>
    %cst_8 = arith.constant 0.000000e+00 : f32
    %16 = vector.broadcast %cst_8 : f32 to vector<8x1xf32>
    %17 = arith.maximumf %15, %16 : vector<8x1xf32>
    %18 = arith.mulf %17, %17 : vector<8x1xf32>
    %19 = arith.mulf %13, %18 : vector<8x1xf32>
    %c8_i32 = arith.constant 8 : i32
    %20 = arith.muli %arg0, %c8_i32 : i32
    %21 = tpu.iota {dimensions = array<i32: 0>} : vector<8x1xi32>
    %22 = vector.broadcast %20 : i32 to vector<8x1xi32>
    %23 = arith.addi %22, %21 : vector<8x1xi32>
    %c8_i32_9 = arith.constant 8 : i32
    %24 = vector.broadcast %c8_i32_9 : i32 to vector<8x1xi32>
    %25 = arith.cmpi slt, %23, %24 : vector<8x1xi32>
    %26 = arith.addf %11, %19 : vector<8x1xf32>
    %cst_10 = arith.constant 0.000000e+00 : f32
    %27 = vector.broadcast %cst_10 : f32 to vector<8x1xf32>
    %28 = arith.select %25, %26, %27 : vector<8x1xi1>, vector<8x1xf32>
    %c0_11 = arith.constant 0 : index
    %c0_12 = arith.constant 0 : index
    %29 = vector.load %arg9[%c0_11, %c0_12] : memref<1x1xf32, #tpu.memory_space<vmem>>, vector<1x1xf32>
    %cst_13 = arith.constant dense<0.000000e+00> : vector<1xf32>
    %30 = vector.multi_reduction <add>, %28, %cst_13 [0] : vector<8x1xf32> to vector<1xf32>
    %31 = vector.shape_cast %30 : vector<1xf32> to vector<1x1xf32>
    %32 = arith.addf %29, %31 : vector<1x1xf32>
    %c0_14 = arith.constant 0 : index
    %c0_15 = arith.constant 0 : index
    %33 = vector.load %arg9[%c0_14, %c0_15] : memref<1x1xf32, #tpu.memory_space<vmem>>, vector<1x1xf32>
    tpu.vector_store %arg9[%c0_14, %c0_15], %32 {strides = array<i32>} : memref<1x1xf32, #tpu.memory_space<vmem>>, vector<1x1xf32>,
    %c0_16 = arith.constant 0 : index
    %c0_17 = arith.constant 0 : index
    %34 = vector.load %arg4[%c0_16, %c0_17] : memref<8x128xf32, #tpu.memory_space<vmem>>, vector<8x128xf32>
    %c0_18 = arith.constant 0 : index
    %c0_19 = arith.constant 0 : index
    %35 = vector.load %arg5[%c0_18, %c0_19] : memref<8x128xf32, #tpu.memory_space<vmem>>, vector<8x128xf32>
    %c0_20 = arith.constant 0 : index
    %c0_21 = arith.constant 0 : index
    %36 = vector.load %arg6[%c0_20, %c0_21] : memref<8x1xf32, #tpu.memory_space<vmem>>, vector<8x1xf32>
    %37 = arith.subf %34, %35 : vector<8x128xf32>
    %38 = math.absf %37 : vector<8x128xf32>
    %cst_22 = arith.constant dense<0.000000e+00> : vector<8xf32>
    %39 = vector.multi_reduction <add>, %38, %cst_22 [1] : vector<8x128xf32> to vector<8xf32>
    %40 = vector.shape_cast %39 : vector<8xf32> to vector<8x1xf32>
    %41 = arith.mulf %36, %40 : vector<8x1xf32>
    %42 = arith.mulf %41, %40 : vector<8x1xf32>
    %cst_23 = arith.constant 1.000000e+00 : f32
    %43 = vector.broadcast %cst_23 : f32 to vector<8x1xf32>
    %44 = arith.subf %43, %36 : vector<8x1xf32>
    %cst_24 = arith.constant 1.000000e+00 : f32
    %45 = vector.broadcast %cst_24 : f32 to vector<8x1xf32>
    %46 = arith.subf %45, %40 : vector<8x1xf32>
    %cst_25 = arith.constant 0.000000e+00 : f32
    %47 = vector.broadcast %cst_25 : f32 to vector<8x1xf32>
    %48 = arith.maximumf %46, %47 : vector<8x1xf32>
    %49 = arith.mulf %48, %48 : vector<8x1xf32>
    %50 = arith.mulf %44, %49 : vector<8x1xf32>
    %c8_i32_26 = arith.constant 8 : i32
    %51 = arith.muli %arg0, %c8_i32_26 : i32
    %52 = tpu.iota {dimensions = array<i32: 0>} : vector<8x1xi32>
    %53 = vector.broadcast %51 : i32 to vector<8x1xi32>
    %54 = arith.addi %53, %52 : vector<8x1xi32>
    %c8_i32_27 = arith.constant 8 : i32
    %55 = vector.broadcast %c8_i32_27 : i32 to vector<8x1xi32>
    %56 = arith.cmpi slt, %54, %55 : vector<8x1xi32>
    %57 = arith.addf %42, %50 : vector<8x1xf32>
    %cst_28 = arith.constant 0.000000e+00 : f32
    %58 = vector.broadcast %cst_28 : f32 to vector<8x1xf32>
    %59 = arith.select %56, %57, %58 : vector<8x1xi1>, vector<8x1xf32>
    %c0_29 = arith.constant 0 : index
    %c0_30 = arith.constant 0 : index
    %60 = vector.load %arg10[%c0_29, %c0_30] : memref<1x1xf32, #tpu.memory_space<vmem>>, vector<1x1xf32>
    %cst_31 = arith.constant dense<0.000000e+00> : vector<1xf32>
    %61 = vector.multi_reduction <add>, %59, %cst_31 [0] : vector<8x1xf32> to vector<1xf32>
    %62 = vector.shape_cast %61 : vector<1xf32> to vector<1x1xf32>
    %63 = arith.addf %60, %62 : vector<1x1xf32>
    %c0_32 = arith.constant 0 : index
    %c0_33 = arith.constant 0 : index
    %64 = vector.load %arg10[%c0_32, %c0_33] : memref<1x1xf32, #tpu.memory_space<vmem>>, vector<1x1xf32>
    tpu.vector_store %arg10[%c0_32, %c0_33], %63 {strides = array<i32>} : memref<1x1xf32, #tpu.memory_space<vmem>>, vector<1x1xf32>,
    %c0_i32_34 = arith.constant 0 : i32
    %65 = arith.cmpi eq, %arg0, %c0_i32_34 : i32
    %66 = arith.extui %65 : i1 to i32
    %c0_i32_35 = arith.constant 0 : i32
    %67 = arith.cmpi ne, %66, %c0_i32_35 : i32
    scf.if %67 {
      %c0_36 = arith.constant 0 : index
      %c0_37 = arith.constant 0 : index
      %68 = vector.load %arg9[%c0_36, %c0_37] : memref<1x1xf32, #tpu.memory_space<vmem>>, vector<1x1xf32>
      %cst_38 = arith.constant 6.250000e-02 : f32
      %69 = vector.broadcast %cst_38 : f32 to vector<1x1xf32>
      %70 = arith.mulf %68, %69 : vector<1x1xf32>
      %c0_39 = arith.constant 0 : index
      %c0_40 = arith.constant 0 : index
      %71 = vector.load %arg7[%c0_39, %c0_40] : memref<1x1xf32, #tpu.memory_space<vmem>>, vector<1x1xf32>
      tpu.vector_store %arg7[%c0_39, %c0_40], %70 {strides = array<i32>} : memref<1x1xf32, #tpu.memory_space<vmem>>, vector<1x1xf32>,
      %c0_41 = arith.constant 0 : index
      %c0_42 = arith.constant 0 : index
      %72 = vector.load %arg10[%c0_41, %c0_42] : memref<1x1xf32, #tpu.memory_space<vmem>>, vector<1x1xf32>
      %cst_43 = arith.constant 6.250000e-02 : f32
      %73 = vector.broadcast %cst_43 : f32 to vector<1x1xf32>
      %74 = arith.mulf %72, %73 : vector<1x1xf32>
      %c0_44 = arith.constant 0 : index
      %c0_45 = arith.constant 0 : index
      %75 = vector.load %arg8[%c0_44, %c0_45] : memref<1x1xf32, #tpu.memory_space<vmem>>, vector<1x1xf32>
      tpu.vector_store %arg8[%c0_44, %c0_45], %74 {strides = array<i32>} : memref<1x1xf32, #tpu.memory_space<vmem>>, vector<1x1xf32>,
    } else {
    }
    return
  }
  func.func @transform_0(%arg0: i32) -> (i32, i32) {
    %c0_i32 = arith.constant 0 : i32
    %c0_i32_0 = arith.constant 0 : i32
    return %arg0, %c0_i32 : i32, i32
  }
  func.func @transform_1(%arg0: i32) -> (i32, i32) {
    %c0_i32 = arith.constant 0 : i32
    %c0_i32_0 = arith.constant 0 : i32
    return %arg0, %c0_i32 : i32, i32
  }
  func.func @transform_2(%arg0: i32) -> (i32, i32) {
    %c0_i32 = arith.constant 0 : i32
    %c0_i32_0 = arith.constant 0 : i32
    return %arg0, %c0_i32 : i32, i32
  }
  func.func @transform_3(%arg0: i32) -> (i32, i32) {
    %c0_i32 = arith.constant 0 : i32
    %c0_i32_0 = arith.constant 0 : i32
    return %arg0, %c0_i32 : i32, i32
  }
  func.func @transform_4(%arg0: i32) -> (i32, i32) {
    %c0_i32 = arith.constant 0 : i32
    %c0_i32_0 = arith.constant 0 : i32
    return %arg0, %c0_i32 : i32, i32
  }
  func.func @transform_5(%arg0: i32) -> (i32, i32) {
    %c0_i32 = arith.constant 0 : i32
    %c0_i32_0 = arith.constant 0 : i32
    return %arg0, %c0_i32 : i32, i32
  }
  func.func @transform_6(%arg0: i32) -> (i32, i32) {
    %c0_i32 = arith.constant 0 : i32
    %c0_i32_0 = arith.constant 0 : i32
    %c0_i32_1 = arith.constant 0 : i32
    return %c0_i32, %c0_i32_0 : i32, i32
  }
  func.func @transform_7(%arg0: i32) -> (i32, i32) {
    %c0_i32 = arith.constant 0 : i32
    %c0_i32_0 = arith.constant 0 : i32
    %c0_i32_1 = arith.constant 0 : i32
    return %c0_i32, %c0_i32_0 : i32, i32
  }
}

</mosaic_0001>

<bundles_post_ra>
// kernel: tpu_custom_call.1
= control target key start
LH: loop header
LB: loop body
LE: loop exit
PB: predicated region body
PF: predicated region fallthrough
CT: control target
= control target key end

     0   :  { %13 = vsyncpa [#allocation5], 0  ;;  %s273_s0 = inlined_call_operand.vmem [shape: f32[8,128], index: 0, kind: input, shape index: {}]   ;;  %s274_s1 = inlined_call_operand.vmem [shape: f32[8,128], index: 1, kind: input, shape index: {}]   ;;  %s275_s2 = inlined_call_operand.vmem [shape: f32[8,1], index: 2, kind: input, shape index: {}]   ;;  %s276_s3 = inlined_call_operand.vmem [shape: f32[8,128], index: 3, kind: input, shape index: {}]   ;;  %s277_s4 = inlined_call_operand.vmem [shape: f32[8,128], index: 4, kind: input, shape index: {}]   ;;  %s278_s5 = inlined_call_operand.vmem [shape: f32[8,1], index: 5, kind: input, shape index: {}]   ;;  %s279_s6 = inlined_call_operand.hbm [shape: f32[1,1], index: 6, kind: output, shape index: {0}]   ;;  %s280_s7 = inlined_call_operand.hbm [shape: f32[1,1], index: 7, kind: output, shape index: {1}]  }
   0x1   :  { %v34_v0 = vld [vmem:[%s273_s0] sm:$0xff] }
   0x2   :  { %v35_v1 = vld [vmem:[%s274_s1] sm:$0xff] }
   0x3   :  { %v68_v2 = vld [vmem:[%s276_s3] sm:$0xff]  ;;  %v37_v3 = vsub.f32 %v34_v0, %v35_v1 }
   0x4   :  { %v69_v4 = vld [vmem:[%s277_s4] sm:$0xff] }
   0x5   :  { %14 = vsyncpa [#allocation7], 0  ;;  %v71_v5 = vsub.f32 %v68_v2, %v69_v4  ;;  %v38_v6 = vand.u32 2147483647, %v37_v3  ;;  %vm31_vm0 = vcmask 0   ;;  %v182_v8 = vmov 0.0  }
   0x6   :  { %32 = vst.msk [vmem:[#allocation2] sm:$0x1] %vm31_vm0, %v182_v8  ;;  %33 = vst.msk [vmem:[#allocation3] sm:$0x1] %vm31_vm0, %v182_v8  ;;  %v36_v9 = vld [vmem:[%s275_s2] sm:$0xff]  ;;  %vm57_vm1 = vcmask 7168  }
   0x7   :  { %39 = vadd.xlane.f32.xlu0 %v38_v6  ;;  %v72_v7 = vand.u32 2147483647, %v71_v5  ;;  %v43_v12 = vsub.f32 1.0, %v36_v9  ;;  %v70_v15 = vld [vmem:[%s278_s5] sm:$0xff]  ;;  %s183_s2 = smov [#allocation4]   ;;  %s184_s9 = smov [#allocation6]  }
   0x8   :  { %v77_v19 = vsub.f32 1.0, %v70_v15  ;;  %s109_s5 = sshll.u32 %s183_s2, 4  ;;  %s119_s10 = sshll.u32 %s184_s9, 4  ;;  %s110_s5 = int_to_ptr.vmem [resolvable:$true] %s109_s5  ;;  %s120_s10 = int_to_ptr.vmem [resolvable:$true] %s119_s10 }
   0x9   :  { %s134_s11 = scalar_lea.vmem %s110_s5, 16  ;;  %s138_s12 = scalar_lea.vmem %s110_s5, 32 }
   0xa   :  { %p135_p0 = scmp.ne.s32.totalorder %s110_s5, %s134_s11  ;;  %p139_p1 = scmp.lt.s32.totalorder %s110_s5, %s110_s5 }
   0xb   :  { %73 = vadd.xlane.f32.xlu0 %v72_v7  ;;  %p140_p2 = scmp.lt.s32.totalorder %s138_s12, %s134_s11 }
   0xd   :  { %v56_v39 = vld [vmem:[#allocation2] sm:$0x1]  ;;  %v84_v44 = vld [vmem:[#allocation3] sm:$0x1]  ;;  %p141_p3 = por %p140_p2, %p139_p1 }
   0xf   :  { %p142_p4 = pnand %p141_p3, %p135_p0 }
  0x94   :  { %v40_v10 = vpop.xlane.xlu0 %39 }
  0x95   :  { %v44_v11 = vsub.f32 1.0, %v40_v10  ;;  %v41_v13 = vmul.f32 %v40_v10, %v36_v9 }
  0x97   :  { %v45_v14 = vmax.f32 %v44_v11, 0.0  ;;  %v42_v20 = vmul.f32 %v41_v13, %v40_v10 }
  0x98   :  { %v74_v16 = vpop.xlane.xlu0 %73 }
  0x99   :  { %v46_v17 = vmul.f32 %v45_v14, %v45_v14  ;;  %v78_v18 = vsub.f32 1.0, %v74_v16  ;;  %v75_v22 = vmul.f32 %v74_v16, %v70_v15 }
  0x9b   :  { %v47_v21 = vmul.f32 %v46_v17, %v43_v12  ;;  %v79_v23 = vmax.f32 %v78_v18, 0.0  ;;  %v76_v27 = vmul.f32 %v75_v22, %v74_v16 }
  0x9d   :  { %v54_v24 = vadd.f32 %v47_v21, %v42_v20  ;;  %v80_v25 = vmul.f32 %v79_v23, %v79_v23 }
  0x9f   :  { %v58_v26 = vsel %vm57_vm1, %v54_v24, 0.0  ;;  %v81_v28 = vmul.f32 %v80_v25, %v77_v19 }
  0xa0   :  { %v59_v29 = vrot.slane %v58_v26, 4 }
  0xa1   :  { %v82_v30 = vadd.f32 %v81_v28, %v76_v27 }
  0xa2   :  { %v60_v31 = vadd.f32 %v59_v29, %v58_v26 }
  0xa3   :  { %v85_v32 = vsel %vm57_vm1, %v82_v30, 0.0 }
  0xa4   :  { %v61_v33 = vrot.slane %v60_v31, 2  ;;  %v86_v34 = vrot.slane %v85_v32, 4 }
  0xa6   :  { %v62_v35 = vadd.f32 %v61_v33, %v60_v31  ;;  %v87_v36 = vadd.f32 %v86_v34, %v85_v32 }
  0xa8   :  { %v63_v37 = vrot.slane %v62_v35, 1  ;;  %v88_v38 = vrot.slane %v87_v36, 2 }
  0xaa   :  { %v64_v40 = vadd.f32 %v63_v37, %v62_v35  ;;  %v89_v41 = vadd.f32 %v88_v38, %v87_v36 }
  0xac   :  { %v90_v42 = vrot.slane %v89_v41, 1  ;;  %v65_v43 = vadd.f32 %v64_v40, %v56_v39 }
  0xae   :  { %v91_v45 = vadd.f32 %v90_v42, %v89_v41  ;;  %67 = vst.msk [vmem:[#allocation2] sm:$0x1] %vm31_vm0, %v65_v43 }
  0xb0   :  { %v92_v46 = vadd.f32 %v91_v45, %v84_v44 }
  0xb2   :  { %93 = vst.msk [vmem:[#allocation3] sm:$0x1] %vm31_vm0, %v92_v46 }
  0xb5   :  { %v97_v47 = vld [vmem:[#allocation2] sm:$0x1] }
  0xb6   :  { %v98_v48 = vmul.f32 0.0625, %v97_v47 }
  0xb8   :  { %99 = vst.msk [vmem:[#allocation4] sm:$0x1] %vm31_vm0, %v98_v48 }
  0xb9   :  { %145 = shalt.err (!%p142_p4)
}
  0xba   :  { %s146_s15 = scalar_lea.hbm %s279_s6, 16 }
  0xbb   :  { %p147_p5 = scmp.ne.s32.totalorder %s279_s6, %s146_s15  ;;  %p150_p6 = scmp.lt.u32.totalorder %s146_s15, %s279_s6 }
  0xbd   :  { %p152_p7 = pnand %p150_p6, %p147_p5 }
  0xbf   :  { %155 = shalt.err (!%p152_p7)
}
  0xc0   :  { %112 = dma.vmem_to_hbm [thread:$0]  %s110_s5, 16, %s279_s6, [#allocation5]   ;;  %v100_v49 = vld [vmem:[#allocation3] sm:$0x1] }
  0xc1   :  { %v101_v50 = vmul.f32 0.0625, %v100_v49  ;;  %s156_s22 = scalar_lea.vmem %s120_s10, 16  ;;  %s160_s23 = scalar_lea.vmem %s120_s10, 32 }
  0xc2   :  { %p157_p8 = scmp.ne.s32.totalorder %s120_s10, %s156_s22  ;;  %p161_p9 = scmp.lt.s32.totalorder %s120_s10, %s120_s10 }
  0xc3   :  { %102 = vst.msk [vmem:[#allocation6] sm:$0x1] %vm31_vm0, %v101_v50  ;;  %p162_p10 = scmp.lt.s32.totalorder %s160_s23, %s156_s22 }
  0xc5   :  { %p163_p11 = por %p162_p10, %p161_p9 }
  0xc7   :  { %p164_p12 = pnand %p163_p11, %p157_p8 }
  0xc9   :  { %167 = shalt.err (!%p164_p12)
}
  0xca   :  { %s168_s26 = scalar_lea.hbm %s280_s7, 16 }
  0xcb   :  { %p169_p13 = scmp.ne.s32.totalorder %s280_s7, %s168_s26  ;;  %p172_p0 = scmp.lt.u32.totalorder %s168_s26, %s280_s7 }
  0xcd   :  { %p174_p1 = pnand %p172_p0, %p169_p13 }
  0xcf   :  { %177 = shalt.err (!%p174_p1)
}
  0xd0   :  { %122 = dma.vmem_to_hbm [thread:$0]  %s120_s10, 16, %s280_s7, [#allocation7]  }
  0xd1   :  { %178 = dma.done.wait [#allocation5], 16  }
  0xd2   :  { %179 = vsyncadd [#allocation5], 4294967280 }
  0xd3   :  { %180 = dma.done.wait [#allocation7], 16  }
  0xd4   :  { %181 = vsyncadd [#allocation7], 4294967280 }
  0xd5   :  { %129 = vsyncpa [#allocation5], 1 }
  0xd6   :  { %130 = vsyncpa [#allocation7], 1 }

</bundles_post_ra>
